<compile_context>
chip_gen: v7x
topology: tpu7x:2x2x1
jax: 0.10.0
libtpu: 0.0.40
codegen_flags: <defaults>
</compile_context>

<pallas_src>
import jax
import jax.numpy as jnp
from jax.experimental import pallas as pl
from jax.experimental.pallas import tpu as pltpu

LANE = 128      # vreg lane axis (last dim of every block)
TILE_R = 1024   # rows per grid block: 1024 * 128 * 4 B = 512 KiB per f32 buffer

PREDICTIONS = "predictions"


# --------------------------------------------------------------------------
# Pallas kernels
# --------------------------------------------------------------------------
def _affine_kernel(scale_ref, shift_ref, x_ref, o_ref):
    # o = x * scale + shift, computed in f32, cast back to the input dtype.
    x = x_ref[...].astype(jnp.float32)
    o_ref[...] = (x * scale_ref[0] + shift_ref[0]).astype(o_ref.dtype)


def _expm1_kernel(x_ref, o_ref):
    # o = expm1(x)  (log1p inverse) -> EUP transcendental path.
    o_ref[...] = jnp.expm1(x_ref[...].astype(jnp.float32)).astype(o_ref.dtype)


# --------------------------------------------------------------------------
# pallas_call wrappers
# --------------------------------------------------------------------------
def _elementwise_call(kernel, x2, scalars=(), transcendental=False):
    """Run an elementwise kernel over a lane-dense (rows, 128) slab."""
    rows = x2.shape[0]
    n_elem = rows * LANE
    itemsize = jnp.dtype(x2.dtype).itemsize
    cost = pl.CostEstimate(
        flops=2 * n_elem,
        transcendentals=n_elem if transcendental else 0,
        bytes_accessed=2 * n_elem * itemsize,
    )
    scalar_specs = [pl.BlockSpec(memory_space=pltpu.SMEM)] * len(scalars)

    if rows <= TILE_R:
        # Small batch: single block equal to the full array dims (legal for
        # any `rows`, no (8,128) divisibility requirement).
        full_spec = pl.BlockSpec((rows, LANE), lambda: (0, 0))
        return pl.pallas_call(
            kernel,
            out_shape=jax.ShapeDtypeStruct((rows, LANE), x2.dtype),
            in_specs=scalar_specs + [full_spec],
            out_specs=full_spec,
            cost_estimate=cost,
        )(*scalars, x2)

    # Large batch: 1-D grid over rows.  BlockSpec double-buffers the tiles and
    # the "parallel" axis lets megacore TPUs shard the row loop across cores.
    grid = (pl.cdiv(rows, TILE_R),)
    tile_spec = pl.BlockSpec((TILE_R, LANE), lambda i: (i, 0))
    return pl.pallas_call(
        kernel,
        out_shape=jax.ShapeDtypeStruct((rows, LANE), x2.dtype),
        grid=grid,
        in_specs=scalar_specs + [tile_spec],
        out_specs=tile_spec,
        compiler_params=pltpu.CompilerParams(dimension_semantics=("parallel",)),
        cost_estimate=cost,
    )(*scalars, x2)


def _to_lane_dense(x):
    """1-D (batch,) -> lane-dense (rows, 128).  Zero-copy when batch % 128 == 0."""
    n = x.shape[0]
    if n % LANE == 0:
        return x.reshape(n // LANE, LANE), n
    pad = (-n) % LANE                     # rare ragged path: one jnp.pad
    return jnp.pad(x, (0, pad)).reshape((n + pad) // LANE, LANE), n


@jax.jit
def _affine_inverse(x, scale, shift):
    x2, n = _to_lane_dense(x)
    out2 = _elementwise_call(_affine_kernel, x2, scalars=(scale, shift))
    out = out2.reshape(-1)                # free: same layout
    return out if out.shape[0] == n else out[:n]


@jax.jit
def _expm1_inverse(x):
    x2, n = _to_lane_dense(x)
    out2 = _elementwise_call(_expm1_kernel, x2, transcendental=True)
    out = out2.reshape(-1)
    return out if out.shape[0] == n else out[:n]


# --------------------------------------------------------------------------
# Module equivalent
# --------------------------------------------------------------------------
class NumberPostprocessing:
    """JAX/Pallas equivalent of ludwig's `_NumberPostprocessing`."""

    def __init__(self, metadata):
        norm = metadata["preprocessing"].get("normalization", None)
        self.predictions_key = PREDICTIONS
        self._norm = norm
        scale = shift = None
        if norm == "zscore":
            sigma = float(metadata["std"])
            mu = float(metadata["mean"])
            if sigma == 0:
                raise RuntimeError("zscore normalization with std == 0")
            scale, shift = sigma, mu
        elif norm == "minmax":
            lo, hi = float(metadata["min"]), float(metadata["max"])
            scale, shift = hi - lo, lo
        elif norm == "iq":
            q1 = float(metadata["q1"])
            q2 = float(metadata["q2"])
            q3 = float(metadata["q3"])
            if q3 - q1 == 0:
                raise RuntimeError("interquartile range is 0")
            scale, shift = q3 - q1, q2
        elif norm == "log1p":
            pass
        elif norm is None:
            scale, shift = 1.0, 0.0
        else:
            raise ValueError(f"unknown normalization: {norm}")

        self._scale = self._shift = None
        if scale is not None:
            # Cache the scalar parameters on device once (f32 for precision
            # even if predictions arrive as bf16).
            self._scale = jnp.asarray([scale], dtype=jnp.float32)
            self._shift = jnp.asarray([shift], dtype=jnp.float32)

    def __call__(self, preds, feature_name):
        predictions = preds[f"{feature_name}::{self.predictions_key}"]
        if predictions.shape[0] == 0:          # explicit empty-batch early-out
            return {self.predictions_key: predictions}
        if self._norm == "log1p":
            out = _expm1_inverse(predictions)
        else:
            out = _affine_inverse(predictions, self._scale, self._shift)
        return {self.predictions_key: out}


# --------------------------------------------------------------------------
# Demo / correctness check
# --------------------------------------------------------------------------
if __name__ == "__main__":
    key = jax.random.PRNGKey(0)
    k0, k1 = jax.random.split(key)
    feature_name = "num_feat"

    # Aligned batch (multiple of 128): zero-copy lane-dense fast path.
    batch = 256
    preds_raw = jax.random.normal(k0, (batch,), dtype=jnp.float32)
    preds = {f"{feature_name}::{PREDICTIONS}": preds_raw}

    # zscore-normalized number feature.
    post = NumberPostprocessing(
        {"preprocessing": {"normalization": "zscore"}, "mean": 2.5, "std": 1.5}
    )
    out = jax.block_until_ready(post(preds, feature_name)[PREDICTIONS])
    ref = preds_raw * 1.5 + 2.5
    assert out.shape == preds_raw.shape and out.dtype == preds_raw.dtype
    assert jnp.allclose(out, ref, rtol=1e-6, atol=1e-6)

    # log1p-normalized number feature (expm1 inverse).
    post_log = NumberPostprocessing({"preprocessing": {"normalization": "log1p"}})
    out_log = jax.block_until_ready(post_log(preds, feature_name)[PREDICTIONS])
    assert jnp.allclose(out_log, jnp.expm1(preds_raw), rtol=1e-5, atol=1e-6)

    # Ragged batch (not a multiple of 128): single-pad fallback path, minmax.
    rag = 100
    preds_rag_raw = jax.random.normal(k1, (rag,), dtype=jnp.float32)
    preds_rag = {f"{feature_name}::{PREDICTIONS}": preds_rag_raw}
    post_mm = NumberPostprocessing(
        {"preprocessing": {"normalization": "minmax"}, "min": -3.0, "max": 7.0}
    )
    out_mm = jax.block_until_ready(post_mm(preds_rag, feature_name)[PREDICTIONS])
    ref_mm = preds_rag_raw * 10.0 + (-3.0)
    assert out_mm.shape == preds_rag_raw.shape and out_mm.dtype == preds_rag_raw.dtype
    assert jnp.allclose(out_mm, ref_mm, rtol=1e-6, atol=1e-6)

    print("KERNEL_OK")
</pallas_src>

<mosaic_0001>
module attributes {stable_mosaic.version = 11 : i64} {
  func.func @_affine_kernel(%arg0: memref<1xf32, #tpu.memory_space<smem>>, %arg1: memref<1xf32, #tpu.memory_space<smem>>, %arg2: memref<2x128xf32, #tpu.memory_space<vmem>>, %arg3: memref<2x128xf32, #tpu.memory_space<vmem>>) attributes {dimension_semantics = [], scalar_prefetch = 0 : i64, scratch_operands = 0 : i64, tpu.core_type = #tpu.core_type<tc>} {
    %c0 = arith.constant 0 : index
    %c0_0 = arith.constant 0 : index
    %0 = vector.load %arg2[%c0, %c0_0] : memref<2x128xf32, #tpu.memory_space<vmem>>, vector<2x128xf32>
    %c0_1 = arith.constant 0 : index
    %1 = memref.load %arg0[%c0_1] : memref<1xf32, #tpu.memory_space<smem>>
    %2 = vector.broadcast %1 : f32 to vector<2x128xf32>
    %3 = arith.mulf %0, %2 : vector<2x128xf32>
    %c0_2 = arith.constant 0 : index
    %4 = memref.load %arg1[%c0_2] : memref<1xf32, #tpu.memory_space<smem>>
    %5 = vector.broadcast %4 : f32 to vector<2x128xf32>
    %6 = arith.addf %3, %5 : vector<2x128xf32>
    %c0_3 = arith.constant 0 : index
    %c0_4 = arith.constant 0 : index
    %7 = vector.load %arg3[%c0_3, %c0_4] : memref<2x128xf32, #tpu.memory_space<vmem>>, vector<2x128xf32>
    tpu.vector_store %arg3[%c0_3, %c0_4], %6 {strides = array<i32>} : memref<2x128xf32, #tpu.memory_space<vmem>>, vector<2x128xf32>,
    return
  }
}

</mosaic_0001>

<bundles_post_ra>
// kernel: _affine_inverse.1
= control target key start
LH: loop header
LB: loop body
LE: loop exit
PB: predicated region body
PF: predicated region fallthrough
CT: control target
= control target key end

     0   :  { %s106_s0 = inlined_call_operand.<no memory space> [shape: f32[1], index: 0, kind: input, shape index: {}]   ;;  %s107_s1 = inlined_call_operand.<no memory space> [shape: f32[1], index: 1, kind: input, shape index: {}]   ;;  %s108_s2 = inlined_call_operand.vmem [shape: f32[2,128], index: 2, kind: input, shape index: {}]   ;;  %s109_s3 = inlined_call_operand.hbm [shape: f32[2,128], index: 3, kind: output, shape index: {}]  }
   0x1   :  { %v17_v0 = vld [vmem:[%s108_s2] sm:$0x3]  ;;  %v19_v1 = vstv %s106_s0  ;;  %v22_v2 = vstv %s107_s1 }
   0x2   :  { %10 = vsyncpa [#allocation5], 0  ;;  %v20_v3 = vmul.f32 %v19_v1, %v17_v0  ;;  %s64_s18 = smov [#allocation4]  }
   0x3   :  { %s31_s19 = sshll.u32 %s64_s18, 4  ;;  %s32_s19 = int_to_ptr.vmem [resolvable:$true] %s31_s19 }
   0x4   :  { %v23_v4 = vadd.f32 %v22_v2, %v20_v3  ;;  %s40_s20 = scalar_lea.vmem %s32_s19, 32  ;;  %p45_p1 = scmp.lt.s32.totalorder %s32_s19, %s32_s19 }
   0x5   :  { %p41_p0 = scmp.ne.s32.totalorder %s32_s19, %s40_s20  ;;  %p46_p2 = scmp.lt.s32.totalorder %s40_s20, %s40_s20 }
   0x6   :  { %24 = vst [vmem:[#allocation4] sm:$0x3] %v23_v4 }
   0x7   :  { %p47_p3 = por %p46_p2, %p45_p1 }
   0x9   :  { %p48_p4 = pnand %p47_p3, %p41_p0 }
   0xb   :  { %51 = shalt.err (!%p48_p4)
}
   0xc   :  { %s52_s21 = scalar_lea.hbm %s109_s3, 32 }
   0xd   :  { %p53_p5 = scmp.ne.s32.totalorder %s109_s3, %s52_s21  ;;  %p56_p6 = scmp.lt.u32.totalorder %s52_s21, %s109_s3 }
   0xf   :  { %p58_p7 = pnand %p56_p6, %p53_p5 }
  0x11   :  { %61 = shalt.err (!%p58_p7)
}
  0x12   :  { %34 = dma.vmem_to_hbm [thread:$0]  %s32_s19, 32, %s109_s3, [#allocation5]  }
  0x13   :  { %62 = dma.done.wait [#allocation5], 32  }
  0x14   :  { %63 = vsyncadd [#allocation5], 4294967264 }
  0x15   :  { %38 = vsyncpa [#allocation5], 1 }

</bundles_post_ra>
